<compile_context>
chip_gen: v5e
topology: v5e:2x2
jax: 0.10.0
libtpu: 0.0.40
codegen_flags: <defaults>
</compile_context>

<pallas_src>
import jax
import jax.numpy as jnp
from jax import lax
from jax.experimental import pallas as pl
from jax.experimental.pallas import tpu as pltpu  # noqa: F401  (TPU backend assumed)

# ----- small, deterministic hyper-params consistent with the module -----
BATCH = 2
CIN = 3             # image channels
H = W = 16
NUM_CHANNEL = 16    # backbone output channels (64 in the original module)
NUM_PART = 8        # num_part (15 in the original module)
NUM_CLASS = 32      # num_class (100 in the original module)
DIM = NUM_CHANNEL * NUM_PART
KH = KW = 3
HW = H * W
KCOL = CIN * KH * KW          # 27
KCOL_PAD = 32                 # zero-padded so the conv contraction dim is aligned


def _fused_kernel(patch_ref, mask_ref, convw_ref, convb_ref,
                  fcw_ref, fcb_ref, spread_ref, csel_ref, out_ref):
    # patch_ref : (B, KCOL_PAD, HW)   mask_ref : (B, P, HW)
    # convw_ref : (C, KCOL_PAD)       convb_ref: (C, 1)
    # fcw_ref   : (NUM_CLASS, DIM)    fcb_ref  : (1, NUM_CLASS)
    # spread_ref: (P, DIM) 0/1 with spread[p, j] = (j % P == p)
    # csel_ref  : (C, DIM) 0/1 with csel[c, j]   = (j // P == c)
    # out_ref   : (B, NUM_CLASS)
    w = convw_ref[...]
    bias = convb_ref[...]
    spread = spread_ref[...]
    csel = csel_ref[...]
    fcw = fcw_ref[...]
    fcb = fcb_ref[...]

    for b in range(BATCH):      # static unroll: whole batch, single program
        # backbone stand-in: 3x3 conv as im2col matmul + bias + ReLU -> (C, HW)
        fm = jnp.dot(w, patch_ref[b], preferred_element_type=jnp.float32)
        fm = jnp.maximum(fm + bias, 0.0)

        # masked part pooling: fv[c, p] = sum_hw fm[c, hw] * mask[p, hw]
        # contract the shared HW lane dims directly (no mask transpose / XLU).
        fv = lax.dot_general(fm, mask_ref[b],
                             dimension_numbers=(((1,), (1,)), ((), ())),
                             preferred_element_type=jnp.float32)          # (C, P)

        # lane-dense flatten (C, P) -> (1, C*P) in PyTorch .view order (c*P+p):
        #   y[c, j] = fv[c, j % P];  keep rows where j // P == c;  sum sublanes.
        y = jnp.dot(fv, spread, preferred_element_type=jnp.float32)       # (C, DIM)
        fv_row = jnp.sum(y * csel, axis=0, keepdims=True)                 # (1, DIM)

        # linear classifier: contract fc_w's dim 1 (nn.Linear (out,in) layout).
        logits = lax.dot_general(fv_row, fcw,
                                 dimension_numbers=(((1,), (1,)), ((), ())),
                                 preferred_element_type=jnp.float32) + fcb

        # numerically stable log_softmax over the class (lane) axis.
        m = jnp.max(logits, axis=-1, keepdims=True)
        s = logits - m
        lse = jnp.log(jnp.sum(jnp.exp(s), axis=-1, keepdims=True))
        out_ref[pl.ds(b, 1), :] = s - lse


def _im2col(x):
    # x: (B, CIN, H, W) -> (B, KCOL_PAD, H*W), stride 1, pad 1 (plain-JAX glue).
    # The trailing KCOL_PAD-KCOL rows are zero, so the conv result is unchanged.
    b = x.shape[0]
    xp = jnp.pad(x, ((0, 0), (0, 0), (1, 1), (1, 1)))
    cols = [xp[:, :, dh:dh + H, dw:dw + W] for dh in range(KH) for dw in range(KW)]
    p = jnp.stack(cols, axis=2).reshape(b, KCOL, HW)
    return jnp.pad(p, ((0, 0), (0, KCOL_PAD - KCOL), (0, 0)))


def transfer_pn_gt_forward(inp, mask, conv_w_pad, conv_b, fc_w, fc_b):
    # conv_w_pad: (C, KCOL_PAD) with zero tail (padded once, outside jit)
    # fc_w:       (NUM_CLASS, DIM) in nn.Linear (out, in) layout (no transpose)
    patches = _im2col(inp)                                    # (B, KCOL_PAD, HW)
    mask_flat = mask.reshape(BATCH, NUM_PART, HW)             # (B, P, HW)

    # tiny 0/1 constants for the in-kernel lane-dense flatten
    # (data-independent -> constant-folded by XLA under jit)
    j = jnp.arange(DIM)
    spread = (j[None, :] % NUM_PART ==
              jnp.arange(NUM_PART)[:, None]).astype(jnp.float32)        # (P, DIM)
    csel = (j[None, :] // NUM_PART ==
            jnp.arange(NUM_CHANNEL)[:, None]).astype(jnp.float32)       # (C, DIM)

    # single program (no grid): everything (~90 KB) fits comfortably in VMEM, so
    # default whole-array blocks are used and there is exactly one kernel launch.
    return pl.pallas_call(
        _fused_kernel,
        out_shape=jax.ShapeDtypeStruct((BATCH, NUM_CLASS), jnp.float32),
    )(patches, mask_flat, conv_w_pad, conv_b, fc_w, fc_b, spread, csel)


if __name__ == "__main__":
    key = jax.random.PRNGKey(0)
    k1, k2, k3, k4, k5, k6 = jax.random.split(key, 6)

    inp = jax.random.normal(k1, (BATCH, CIN, H, W), jnp.float32)
    # ground-truth part masks (binary), shape (B, num_part, H, W)
    mask = (jax.random.uniform(k2, (BATCH, NUM_PART, H, W)) > 0.5).astype(jnp.float32)

    # deterministic synthetic parameters
    conv_w = 0.1 * jax.random.normal(k3, (NUM_CHANNEL, KCOL), jnp.float32)
    conv_b = 0.1 * jax.random.normal(k4, (NUM_CHANNEL, 1), jnp.float32)
    fc_w = 0.05 * jax.random.normal(k5, (NUM_CLASS, DIM), jnp.float32)   # (out, in) like nn.Linear
    fc_b = 0.05 * jax.random.normal(k6, (1, NUM_CLASS), jnp.float32)

    # pad the conv weight's contraction dim once, outside the jitted forward
    conv_w_pad = jnp.pad(conv_w, ((0, 0), (0, KCOL_PAD - KCOL)))

    fwd = jax.jit(transfer_pn_gt_forward)
    out = fwd(inp, mask, conv_w_pad, conv_b, fc_w, fc_b)
    out = jax.block_until_ready(out)

    # pure-JAX reference check
    patches = _im2col(inp)                                              # (B, KCOL_PAD, HW)
    fm = jnp.maximum(jnp.einsum('ok,bkh->boh', conv_w_pad, patches) + conv_b[None], 0.0)
    fv_ref = jnp.einsum('bch,bph->bcp', fm, mask.reshape(BATCH, NUM_PART, HW))
    logits = fv_ref.reshape(BATCH, DIM) @ fc_w.T + fc_b
    ref = jax.nn.log_softmax(logits, axis=-1)
    assert out.shape == (BATCH, NUM_CLASS)
    assert jnp.allclose(out, ref, atol=1e-4, rtol=1e-4), "kernel/reference mismatch"

    print("KERNEL_OK")
</pallas_src>

<mosaic_0001>
module attributes {stable_mosaic.version = 11 : i64} {
  func.func @_fused_kernel(%arg0: memref<2x32x256xf32, #tpu.memory_space<vmem>>, %arg1: memref<2x8x256xf32, #tpu.memory_space<vmem>>, %arg2: memref<16x32xf32, #tpu.memory_space<vmem>>, %arg3: memref<16x1xf32, #tpu.memory_space<vmem>>, %arg4: memref<32x128xf32, #tpu.memory_space<vmem>>, %arg5: memref<1x32xf32, #tpu.memory_space<vmem>>, %arg6: memref<8x128xf32, #tpu.memory_space<vmem>>, %arg7: memref<16x128xf32, #tpu.memory_space<vmem>>, %arg8: memref<2x32xf32, #tpu.memory_space<vmem>>) attributes {dimension_semantics = [], scalar_prefetch = 0 : i64, scratch_operands = 0 : i64, tpu.core_type = #tpu.core_type<tc>} {
    %c0 = arith.constant 0 : index
    %c0_0 = arith.constant 0 : index
    %0 = vector.load %arg2[%c0, %c0_0] : memref<16x32xf32, #tpu.memory_space<vmem>>, vector<16x32xf32>
    %c0_1 = arith.constant 0 : index
    %c0_2 = arith.constant 0 : index
    %1 = vector.load %arg3[%c0_1, %c0_2] : memref<16x1xf32, #tpu.memory_space<vmem>>, vector<16x1xf32>
    %c0_3 = arith.constant 0 : index
    %c0_4 = arith.constant 0 : index
    %2 = vector.load %arg6[%c0_3, %c0_4] : memref<8x128xf32, #tpu.memory_space<vmem>>, vector<8x128xf32>
    %c0_5 = arith.constant 0 : index
    %c0_6 = arith.constant 0 : index
    %3 = vector.load %arg7[%c0_5, %c0_6] : memref<16x128xf32, #tpu.memory_space<vmem>>, vector<16x128xf32>
    %c0_7 = arith.constant 0 : index
    %c0_8 = arith.constant 0 : index
    %4 = vector.load %arg4[%c0_7, %c0_8] : memref<32x128xf32, #tpu.memory_space<vmem>>, vector<32x128xf32>
    %c0_9 = arith.constant 0 : index
    %c0_10 = arith.constant 0 : index
    %5 = vector.load %arg5[%c0_9, %c0_10] : memref<1x32xf32, #tpu.memory_space<vmem>>, vector<1x32xf32>
    %c0_11 = arith.constant 0 : index
    %c0_12 = arith.constant 0 : index
    %c0_13 = arith.constant 0 : index
    %6 = vector.load %arg0[%c0_11, %c0_12, %c0_13] : memref<2x32x256xf32, #tpu.memory_space<vmem>>, vector<1x32x256xf32>
    %7 = vector.shape_cast %6 : vector<1x32x256xf32> to vector<32x256xf32>
    %cst = arith.constant dense<0.000000e+00> : vector<16x256xf32>
    %8 = tpu.matmul %0, %7, %cst {dimension_numbers = #tpu.dot_dimension_numbers<[1], [0], [0], [1], [0, 0, 1, 1], [], []>} : vector<16x32xf32>, vector<32x256xf32>, vector<16x256xf32> -> vector<16x256xf32>
    %9 = vector.broadcast %1 : vector<16x1xf32> to vector<16x256xf32>
    %10 = arith.addf %8, %9 : vector<16x256xf32>
    %cst_14 = arith.constant 0.000000e+00 : f32
    %11 = vector.broadcast %cst_14 : f32 to vector<16x256xf32>
    %12 = arith.maximumf %10, %11 : vector<16x256xf32>
    %c0_15 = arith.constant 0 : index
    %c0_16 = arith.constant 0 : index
    %c0_17 = arith.constant 0 : index
    %13 = vector.load %arg1[%c0_15, %c0_16, %c0_17] : memref<2x8x256xf32, #tpu.memory_space<vmem>>, vector<1x8x256xf32>
    %14 = vector.shape_cast %13 : vector<1x8x256xf32> to vector<8x256xf32>
    %cst_18 = arith.constant dense<0.000000e+00> : vector<16x8xf32>
    %15 = tpu.matmul %12, %14, %cst_18 {dimension_numbers = #tpu.dot_dimension_numbers<[1], [1], [0], [0], [0, 0, 1, 0], [], []>} : vector<16x256xf32>, vector<8x256xf32>, vector<16x8xf32> -> vector<16x8xf32>
    %cst_19 = arith.constant dense<0.000000e+00> : vector<16x128xf32>
    %16 = tpu.matmul %15, %2, %cst_19 {dimension_numbers = #tpu.dot_dimension_numbers<[1], [0], [0], [1], [0, 0, 1, 1], [], []>} : vector<16x8xf32>, vector<8x128xf32>, vector<16x128xf32> -> vector<16x128xf32>
    %17 = arith.mulf %16, %3 : vector<16x128xf32>
    %cst_20 = arith.constant dense<0.000000e+00> : vector<128xf32>
    %18 = vector.multi_reduction <add>, %17, %cst_20 [0] : vector<16x128xf32> to vector<128xf32>
    %19 = vector.shape_cast %18 : vector<128xf32> to vector<1x128xf32>
    %cst_21 = arith.constant dense<0.000000e+00> : vector<1x32xf32>
    %20 = tpu.matmul %19, %4, %cst_21 {dimension_numbers = #tpu.dot_dimension_numbers<[1], [1], [0], [0], [0, 0, 1, 0], [], []>} : vector<1x128xf32>, vector<32x128xf32>, vector<1x32xf32> -> vector<1x32xf32>
    %21 = arith.addf %20, %5 : vector<1x32xf32>
    %cst_22 = arith.constant dense<0xFF800000> : vector<1xf32>
    %22 = vector.multi_reduction <maximumf>, %21, %cst_22 [1] : vector<1x32xf32> to vector<1xf32>
    %23 = vector.shape_cast %22 : vector<1xf32> to vector<1x1xf32>
    %24 = vector.broadcast %23 : vector<1x1xf32> to vector<1x32xf32>
    %25 = arith.subf %21, %24 : vector<1x32xf32>
    %26 = math.exp %25 : vector<1x32xf32>
    %cst_23 = arith.constant dense<0.000000e+00> : vector<1xf32>
    %27 = vector.multi_reduction <add>, %26, %cst_23 [1] : vector<1x32xf32> to vector<1xf32>
    %28 = vector.shape_cast %27 : vector<1xf32> to vector<1x1xf32>
    %29 = math.log %28 : vector<1x1xf32>
    %30 = vector.broadcast %29 : vector<1x1xf32> to vector<1x32xf32>
    %31 = arith.subf %25, %30 : vector<1x32xf32>
    %c0_24 = arith.constant 0 : index
    %c0_25 = arith.constant 0 : index
    %32 = vector.load %arg8[%c0_24, %c0_25] : memref<2x32xf32, #tpu.memory_space<vmem>>, vector<1x32xf32>
    tpu.vector_store %arg8[%c0_24, %c0_25], %31 {strides = array<i32>} : memref<2x32xf32, #tpu.memory_space<vmem>>, vector<1x32xf32>,
    %c1 = arith.constant 1 : index
    %c0_26 = arith.constant 0 : index
    %c0_27 = arith.constant 0 : index
    %33 = vector.load %arg0[%c1, %c0_26, %c0_27] : memref<2x32x256xf32, #tpu.memory_space<vmem>>, vector<1x32x256xf32>
    %34 = vector.shape_cast %33 : vector<1x32x256xf32> to vector<32x256xf32>
    %cst_28 = arith.constant dense<0.000000e+00> : vector<16x256xf32>
    %35 = tpu.matmul %0, %34, %cst_28 {dimension_numbers = #tpu.dot_dimension_numbers<[1], [0], [0], [1], [0, 0, 1, 1], [], []>} : vector<16x32xf32>, vector<32x256xf32>, vector<16x256xf32> -> vector<16x256xf32>
    %36 = vector.broadcast %1 : vector<16x1xf32> to vector<16x256xf32>
    %37 = arith.addf %35, %36 : vector<16x256xf32>
    %cst_29 = arith.constant 0.000000e+00 : f32
    %38 = vector.broadcast %cst_29 : f32 to vector<16x256xf32>
    %39 = arith.maximumf %37, %38 : vector<16x256xf32>
    %c1_30 = arith.constant 1 : index
    %c0_31 = arith.constant 0 : index
    %c0_32 = arith.constant 0 : index
    %40 = vector.load %arg1[%c1_30, %c0_31, %c0_32] : memref<2x8x256xf32, #tpu.memory_space<vmem>>, vector<1x8x256xf32>
    %41 = vector.shape_cast %40 : vector<1x8x256xf32> to vector<8x256xf32>
    %cst_33 = arith.constant dense<0.000000e+00> : vector<16x8xf32>
    %42 = tpu.matmul %39, %41, %cst_33 {dimension_numbers = #tpu.dot_dimension_numbers<[1], [1], [0], [0], [0, 0, 1, 0], [], []>} : vector<16x256xf32>, vector<8x256xf32>, vector<16x8xf32> -> vector<16x8xf32>
    %cst_34 = arith.constant dense<0.000000e+00> : vector<16x128xf32>
    %43 = tpu.matmul %42, %2, %cst_34 {dimension_numbers = #tpu.dot_dimension_numbers<[1], [0], [0], [1], [0, 0, 1, 1], [], []>} : vector<16x8xf32>, vector<8x128xf32>, vector<16x128xf32> -> vector<16x128xf32>
    %44 = arith.mulf %43, %3 : vector<16x128xf32>
    %cst_35 = arith.constant dense<0.000000e+00> : vector<128xf32>
    %45 = vector.multi_reduction <add>, %44, %cst_35 [0] : vector<16x128xf32> to vector<128xf32>
    %46 = vector.shape_cast %45 : vector<128xf32> to vector<1x128xf32>
    %cst_36 = arith.constant dense<0.000000e+00> : vector<1x32xf32>
    %47 = tpu.matmul %46, %4, %cst_36 {dimension_numbers = #tpu.dot_dimension_numbers<[1], [1], [0], [0], [0, 0, 1, 0], [], []>} : vector<1x128xf32>, vector<32x128xf32>, vector<1x32xf32> -> vector<1x32xf32>
    %48 = arith.addf %47, %5 : vector<1x32xf32>
    %cst_37 = arith.constant dense<0xFF800000> : vector<1xf32>
    %49 = vector.multi_reduction <maximumf>, %48, %cst_37 [1] : vector<1x32xf32> to vector<1xf32>
    %50 = vector.shape_cast %49 : vector<1xf32> to vector<1x1xf32>
    %51 = vector.broadcast %50 : vector<1x1xf32> to vector<1x32xf32>
    %52 = arith.subf %48, %51 : vector<1x32xf32>
    %53 = math.exp %52 : vector<1x32xf32>
    %cst_38 = arith.constant dense<0.000000e+00> : vector<1xf32>
    %54 = vector.multi_reduction <add>, %53, %cst_38 [1] : vector<1x32xf32> to vector<1xf32>
    %55 = vector.shape_cast %54 : vector<1xf32> to vector<1x1xf32>
    %56 = math.log %55 : vector<1x1xf32>
    %57 = vector.broadcast %56 : vector<1x1xf32> to vector<1x32xf32>
    %58 = arith.subf %52, %57 : vector<1x32xf32>
    %c1_39 = arith.constant 1 : index
    %c0_40 = arith.constant 0 : index
    %59 = vector.load %arg8[%c1_39, %c0_40] : memref<2x32xf32, #tpu.memory_space<vmem>>, vector<1x32xf32>
    tpu.vector_store %arg8[%c1_39, %c0_40], %58 {strides = array<i32>} : memref<2x32xf32, #tpu.memory_space<vmem>>, vector<1x32xf32>,
    return
  }
}

</mosaic_0001>

<bundles_post_ra>
// kernel: transfer_pn_gt_forward.1
= control target key start
LH: loop header
LB: loop body
LE: loop exit
PB: predicated region body
PF: predicated region fallthrough
CT: control target
= control target key end

     0   :  { %v496_v6 = vmov 0   ;;  %vm60_vm0 = vcmask 261120   ;;  %s694_s0 = inlined_call_operand.vmem [shape: f32[2,32,256], index: 0, kind: input, shape index: {}]   ;;  %s695_s1 = inlined_call_operand.vmem [shape: f32[2,8,256], index: 1, kind: input, shape index: {}]   ;;  %s696_s2 = inlined_call_operand.vmem [shape: f32[16,32], index: 2, kind: input, shape index: {}]   ;;  %s697_s3 = inlined_call_operand.vmem [shape: f32[16,1], index: 3, kind: input, shape index: {}]   ;;  %s698_s4 = inlined_call_operand.vmem [shape: f32[32,128], index: 4, kind: input, shape index: {}]   ;;  %s699_s5 = inlined_call_operand.vmem [shape: f32[1,32], index: 5, kind: input, shape index: {}]   ;;  %s700_s6 = inlined_call_operand.vmem [shape: f32[8,128], index: 6, kind: input, shape index: {}]   ;;  %s701_s7 = inlined_call_operand.vmem [shape: f32[16,128], index: 7, kind: input, shape index: {}]   ;;  %s702_s8 = inlined_call_operand.hbm [shape: f32[2,32], index: 8, kind: output, shape index: {}]  }
   0x1   :  { %v48_v0 = vld [vmem:[%s694_s0 + $0x30] sm:$0xff]  ;;  %v49_v1 = vld [vmem:[%s694_s0 + $0x38] sm:$0xff]  ;;  %v46_v2 = vld [vmem:[%s694_s0 + $0x20] sm:$0xff]  ;;  %461 = vset.pattern.permute.xlu0 %v496_v6 }
   0x2   :  { %79 = vmatpush.msra.mxu0 %v48_v0  ;;  %102 = vmatpush.msra.mxu1 %v49_v1  ;;  %v47_v3 = vld [vmem:[%s694_s0 + $0x28] sm:$0xff]  ;;  %v44_v4 = vld [vmem:[%s694_s0 + $0x10] sm:$0xff]  ;;  %v45_v5 = vld [vmem:[%s694_s0 + $0x18] sm:$0xff] }
   0x3   :  { %v32_v7 = vld [vmem:[%s697_s3] sm:$0xff]  ;;  %v43_v9 = vld [vmem:[%s694_s0 + $0x8] sm:$0xff]  ;;  %v576_v11 = vld [vmem:[%s694_s0 + $0x70] sm:$0xff] }
   0x4   :  { %80 = vmatpush.msra.mxu0 %v46_v2  ;;  %103 = vmatpush.msra.mxu1 %v47_v3  ;;  %v42_v8 = vld [vmem:[%s694_s0] sm:$0xff]  ;;  %v446_v12 = vld [vmem:[%s694_s0 + $0x78] sm:$0xff] }
   0x5   :  { %52 = vperm.xlu0 %461, %v32_v7   ;;  %v30_v10 = vld [vmem:[%s696_s2] sm:$0xff] }
   0x6   :  { %81 = vmatpush.msra.mxu0 %v44_v4  ;;  %104 = vmatpush.msra.mxu1 %v45_v5 }
   0x7   :  { %13 = vsyncpa [#allocation3], 0  ;;  %v586_v13 = vld [vmem:[%s694_s0 + $0x60] sm:$0xff]  ;;  %v444_v14 = vld [vmem:[%s694_s0 + $0x68] sm:$0xff]  ;;  %vm165_vm1 = vcmask 64512   ;;  %vm224_vm2 = vcmask 253952  }
   0x8   :  { %82 = vmatpush.msra.mxu0 %v42_v8  ;;  %105 = vmatpush.msra.mxu1 %v43_v9  ;;  %v33_v15 = vld [vmem:[%s697_s3 + $0x8] sm:$0xff]  ;;  %v598_v16 = vld [vmem:[%s694_s0 + $0x50] sm:$0xff]  ;;  %v442_v17 = vld [vmem:[%s694_s0 + $0x58] sm:$0xff]  ;;  %s424_s20 = sshll.u32 %s702_s8, 4  ;;  %s425_s20 = int_to_ptr.hbm [resolvable:$true] %s424_s20 }
   0x9   :  { %433 = vmatmul.msk.f32.vlgmr.msra.gmra.mxu0 %vm60_vm0, %v30_v10  ;;  %435 = vmatmul.msk.f32.vlgmr.msra.gmra.mxu1 %vm60_vm0, %v30_v10  ;;  %v607_v18 = vld [vmem:[%s694_s0 + $0x40] sm:$0xff]  ;;  %v440_v19 = vld [vmem:[%s694_s0 + $0x48] sm:$0xff]  ;;  %v452_v38 = vld [vmem:[%s695_s1 + $0x18] sm:$0xff] }
   0xa   :  { %259 = vmatpush.msrb.mxu0 %v576_v11  ;;  %282 = vmatpush.msrb.mxu1 %v446_v12  ;;  %v615_v20 = vld [vmem:[%s696_s2 + $0x8] sm:$0xff]  ;;  %v117_v21 = vld [vmem:[%s695_s1] sm:$0xff]  ;;  %v40_v51 = vld [vmem:[%s698_s4 + $0x18] sm:$0xff] }
   0xb   :  { %v118_v22 = vld [vmem:[%s695_s1 + $0x8] sm:$0xff]  ;;  %134 = vmatpush.xpose.msra.mxu2 %v117_v21  ;;  %v34_v23 = vld [vmem:[%s700_s6] sm:$0xff]  ;;  %v39_v52 = vld [vmem:[%s698_s4 + $0x10] sm:$0xff] }
   0xc   :  { %260 = vmatpush.msrb.mxu0 %v586_v13  ;;  %283 = vmatpush.msrb.mxu1 %v444_v14  ;;  %v38_v53 = vld [vmem:[%s698_s4 + $0x8] sm:$0xff]  ;;  %v37_v54 = vld [vmem:[%s698_s4] sm:$0xff]  ;;  %v451_v4 = vld [vmem:[%s695_s1 + $0x10] sm:$0xff]  ;;  %s497_s1 = smov [#allocation2]  }
   0xd   :  { %57 = vperm.xlu0 %461, %v33_v15   ;;  %157 = vmatpush.xpose.msra.mxu3 %v118_v22  ;;  %v35_v56 = vld [vmem:[%s701_s7] sm:$0xff]  ;;  %v36_v57 = vld [vmem:[%s701_s7 + $0x8] sm:$0xff] }
   0xe   :  { %261 = vmatpush.msrb.mxu0 %v598_v16  ;;  %284 = vmatpush.msrb.mxu1 %v442_v17  ;;  %v41_v8 = vld [vmem:[%s699_s5] sm:$0x1]  ;;  %s422_s5 = sshll.u32 %s497_s1, 4  ;;  %s423_s5 = int_to_ptr.vmem [resolvable:$true] %s422_s5 }
   0xf   :  { %187 = vmatpush.msrb.mxu2 %v34_v23 }
  0x10   :  { %262 = vmatpush.msrb.mxu0 %v607_v18  ;;  %285 = vmatpush.msrb.mxu1 %v440_v19 }
  0x11   :  { %434 = vmatmul.msk.f32.gmra.mxu0 %vm60_vm0, %v615_v20  ;;  %436 = vmatmul.msk.f32.gmra.mxu1 %vm60_vm0, %v615_v20 }
  0x12   :  { %367 = vmatpush.msra.mxu0 %v34_v23  ;;  %216 = vmatpush.xpose.msrb.mxu3 %v40_v51 }
  0x13   :  { %396 = vmatpush.xpose.msra.mxu1 %v40_v51 }
  0x16   :  { %217 = vmatpush.xpose.msrb.mxu3 %v39_v52 }
  0x17   :  { %397 = vmatpush.xpose.msra.mxu1 %v39_v52 }
  0x19   :  { %447 = vmatmul.msk.f32.vlgmr.msrb.gmra.mxu0 %vm60_vm0, %v30_v10  ;;  %449 = vmatmul.msk.f32.vlgmr.msrb.gmra.mxu1 %vm60_vm0, %v30_v10 }
  0x1a   :  { %218 = vmatpush.xpose.msrb.mxu3 %v38_v53 }
  0x1b   :  { %398 = vmatpush.xpose.msra.mxu1 %v38_v53 }
  0x1e   :  { %219 = vmatpush.xpose.msrb.mxu3 %v37_v54 }
  0x1f   :  { %399 = vmatpush.xpose.msra.mxu1 %v37_v54 }
  0x21   :  { %450 = vmatmul.msk.f32.gmra.mxu1 %vm60_vm0, %v615_v20 }
  0x77   :  { %v636_v24 = vpop.permute.xlu0 %52 }
  0x7f   :  { %v640_v31 = vpop.permute.xlu0 %57 }
  0x86   :  { %v84_v25 = vpop.f32.mrf.mxu0  ;;  %v107_v26 = vpop.f32.mrf.mxu1 }
  0x87   :  { %v85_v27 = vadd.f32 %v84_v25, %v636_v24  ;;  %v108_v28 = vadd.f32 %v107_v26, %v636_v24 }
  0x89   :  { %v113_v29 = vmax.f32 %v85_v27, 0.0  ;;  %v114_v30 = vmax.f32 %v108_v28, 0.0 }
  0x8b   :  { %135 = vmatmul.f32.vlgmr.msra.gmra.mxu2 %v113_v29  ;;  %158 = vmatmul.f32.vlgmr.msra.gmra.mxu3 %v114_v30 }
  0x8c   :  { %338 = vmatpush.xpose.msra.mxu2 %v452_v38  ;;  %455 = vmatpush.msra.mxu3 %v576_v11 }
  0x8e   :  { %v87_v32 = vpop.f32.mrf.mxu0  ;;  %v110_v33 = vpop.f32.mrf.mxu1  ;;  %456 = vmatpush.msra.mxu3 %v586_v13 }
  0x8f   :  { %v88_v34 = vadd.f32 %v87_v32, %v640_v31  ;;  %v111_v35 = vadd.f32 %v110_v33, %v640_v31 }
  0x90   :  { %457 = vmatpush.msra.mxu3 %v598_v16 }
  0x91   :  { %v115_v36 = vmax.f32 %v88_v34, 0.0  ;;  %v116_v37 = vmax.f32 %v111_v35, 0.0 }
  0x92   :  { %458 = vmatpush.msra.mxu3 %v607_v18 }
  0x93   :  { %138 = vmatmul.f32.gmra.mxu2 %v115_v36  ;;  %161 = vmatmul.f32.gmra.mxu3 %v116_v37 }
  0x96   :  { %v287_v42 = vpop.f32.mrf.mxu1  ;;  %v264_v5 = vpop.f32.mrf.mxu0 }
  0x97   :  { %v288_v46 = vadd.f32 %v287_v42, %v636_v24  ;;  %v265_v6 = vadd.f32 %v264_v5, %v636_v24 }
  0x99   :  { %v294_v47 = vmax.f32 %v288_v46, 0.0  ;;  %v293_v7 = vmax.f32 %v265_v6, 0.0 }
  0x9e   :  { %v290_v48 = vpop.f32.mrf.mxu1 }
  0x9f   :  { %v291_v49 = vadd.f32 %v290_v48, %v640_v31 }
  0xa1   :  { %v296_v50 = vmax.f32 %v291_v49, 0.0 }
 0x10e   :  { %v136_v39 = vpop.f32.mrf.mxu2  ;;  %v159_v40 = vpop.f32.mrf.mxu3 }
 0x10f   :  { %v160_v41 = vadd.f32 %v159_v40, %v136_v39 }
 0x111   :  { %437 = vmatmul.msk.f32.vlgmr.msrb.gmra.mxu2 %vm165_vm1, %v160_v41 }
 0x116   :  { %v139_v43 = vpop.f32.mrf.mxu2  ;;  %v162_v44 = vpop.f32.mrf.mxu3 }
 0x117   :  { %v163_v45 = vadd.f32 %v162_v44, %v139_v43 }
 0x119   :  { %438 = vmatmul.msk.f32.gmra.mxu2 %vm165_vm1, %v163_v45 }
 0x121   :  { %339 = vmatmul.f32.vlgmr.msra.gmra.mxu2 %v294_v47 }
 0x129   :  { %342 = vmatmul.f32.gmra.mxu2 %v296_v50 }
 0x194   :  { %v189_v55 = vpop.f32.mrf.mxu2 }
 0x195   :  { %v195_v59 = vmul.f32 %v189_v55, %v35_v56 }
 0x19c   :  { %v192_v58 = vpop.f32.mrf.mxu2 }
 0x19d   :  { %v196_v60 = vmul.f32 %v192_v58, %v36_v57 }
 0x19f   :  { %v197_v61 = vadd.f32 %v196_v60, %v195_v59 }
 0x1a1   :  { %v198_v62 = vrot.slane %v197_v61, 4 }
 0x1a3   :  { %v199_v63 = vadd.f32 %v198_v62, %v197_v61 }
 0x1a4   :  { %v340_v15 = vpop.f32.mrf.mxu2 }
 0x1a5   :  { %v200_v0 = vrot.slane %v199_v63, 2 }
 0x1a7   :  { %v201_v1 = vadd.f32 %v200_v0, %v199_v63 }
 0x1a9   :  { %v202_v2 = vrot.slane %v201_v1, 1 }
 0x1ab   :  { %v203_v3 = vadd.f32 %v202_v2, %v201_v1 }
 0x1ac   :  { %v343_v23 = vpop.f32.mrf.mxu2 }
 0x1ad   :  { %220 = vmatmul.f32.vlgmr.msrb.gmra.mxu3 %v203_v3 }
 0x1ae   :  { %315 = vmatpush.xpose.msrb.mxu3 %v451_v4 }
 0x1b5   :  { %448 = vmatmul.msk.f32.vlgmr.msra.gmra.mxu3 %vm60_vm0, %v615_v20 }
 0x1bd   :  { %316 = vmatmul.f32.vlgmr.msrb.gmra.mxu3 %v293_v7 }
 0x230   :  { %v221_v9 = vpop.f32.mrf.mxu3 }
 0x231   :  { %v222_v10 = vadd.f32 %v221_v9, %v41_v8 }
 0x233   :  { %v225_v11 = vsel %vm224_vm2, %v222_v10, -inf }
 0x234   :  { %226 = vmax.xlane.f32.xlu1 %v225_v11 }
 0x238   :  { %v267_v12 = vpop.f32.mrf.mxu3 }
 0x239   :  { %v268_v13 = vadd.f32 %v267_v12, %v640_v31 }
 0x23b   :  { %v295_v14 = vmax.f32 %v268_v13, 0.0 }
 0x23d   :  { %319 = vmatmul.f32.gmra.mxu3 %v295_v14 }
 0x240   :  { %v317_v16 = vpop.f32.mrf.mxu3 }
 0x241   :  { %v341_v17 = vadd.f32 %v340_v15, %v317_v16 }
 0x243   :  { %453 = vmatmul.msk.f32.vlgmr.msra.gmra.mxu0 %vm165_vm1, %v341_v17 }
 0x2a7   :  { %v227_v18 = vpop.xlane.xlu1 %226 }
 0x2a8   :  { %v228_v19 = vsub.f32 %v222_v10, %v227_v18 }
 0x2aa   :  { %v229_v20 = vmul.f32 1.442695, %v228_v19 }
 0x2ac   :  { %462 = vpow2.f32 %v229_v20 }
 0x2b2   :  { %v463_v21 = vpop.eup %462 }
 0x2b3   :  { %v231_v22 = vsel %vm224_vm2, %v463_v21, 0.0 }
 0x2b4   :  { %232 = vadd.xlane.f32.xlu2 %v231_v22 }
 0x2c0   :  { %v320_v24 = vpop.f32.mrf.mxu3  ;;  %v369_v30 = vpop.f32.mrf.mxu0 }
 0x2c1   :  { %v344_v25 = vadd.f32 %v343_v23, %v320_v24  ;;  %v375_v32 = vmul.f32 %v369_v30, %v35_v56 }
 0x2c3   :  { %454 = vmatmul.msk.f32.gmra.mxu0 %vm165_vm1, %v344_v25 }
 0x327   :  { %v233_v26 = vpop.xlane.xlu2 %232 }
 0x328   :  { %464 = vlog2.f32 %v233_v26 }
 0x32e   :  { %v465_v27 = vpop.eup %464 }
 0x32f   :  { %v235_v28 = vmul.f32 0.6931472, %v465_v27 }
 0x331   :  { %v236_v29 = vsub.f32 %v228_v19, %v235_v28 }
 0x333   :  { %237 = vst.msk [vmem:[#allocation2] sm:$0x1] %vm224_vm2, %v236_v29 }
 0x340   :  { %v372_v31 = vpop.f32.mrf.mxu0 }
 0x341   :  { %v376_v33 = vmul.f32 %v372_v31, %v36_v57 }
 0x343   :  { %v377_v34 = vadd.f32 %v376_v33, %v375_v32 }
 0x345   :  { %v378_v35 = vrot.slane %v377_v34, 4 }
 0x347   :  { %v379_v36 = vadd.f32 %v378_v35, %v377_v34 }
 0x349   :  { %v380_v37 = vrot.slane %v379_v36, 2 }
 0x34b   :  { %v381_v38 = vadd.f32 %v380_v37, %v379_v36 }
 0x34d   :  { %v382_v39 = vrot.slane %v381_v38, 1 }
 0x34f   :  { %v383_v40 = vadd.f32 %v382_v39, %v381_v38 }
 0x351   :  { %400 = vmatmul.f32.vlgmr.msra.gmra.mxu1 %v383_v40 }
 0x3ce   :  { %v401_v41 = vpop.f32.mrf.mxu1 }
 0x3cf   :  { %v402_v42 = vadd.f32 %v401_v41, %v41_v8 }
 0x3d1   :  { %v404_v43 = vsel %vm224_vm2, %v402_v42, -inf }
 0x3d2   :  { %405 = vmax.xlane.f32.xlu1 %v404_v43 }
 0x445   :  { %v406_v44 = vpop.xlane.xlu1 %405 }
 0x446   :  { %v407_v45 = vsub.f32 %v402_v42, %v406_v44 }
 0x448   :  { %v408_v46 = vmul.f32 1.442695, %v407_v45 }
 0x44a   :  { %466 = vpow2.f32 %v408_v46 }
 0x450   :  { %v467_v47 = vpop.eup %466 }
 0x451   :  { %v410_v48 = vsel %vm224_vm2, %v467_v47, 0.0 }
 0x452   :  { %411 = vadd.xlane.f32.xlu2 %v410_v48 }
 0x4c5   :  { %v412_v49 = vpop.xlane.xlu2 %411 }
 0x4c6   :  { %468 = vlog2.f32 %v412_v49 }
 0x4cc   :  { %v469_v50 = vpop.eup %468 }
 0x4cd   :  { %v414_v51 = vmul.f32 0.6931472, %v469_v50 }
 0x4cf   :  { %v415_v52 = vsub.f32 %v407_v45, %v414_v51 }
 0x4d1   :  { %416 = vst.msk [vmem:[#allocation2 + $0x1] sm:$0x1] %vm224_vm2, %v415_v52 }
 0x4d2   :  { %427 = dma.vmem_to_hbm [thread:$0]  %s423_s5, 32, %s425_s20, [#allocation3]  }
 0x4d3   :  { %494 = dma.done.wait [#allocation3], 32  }
 0x4d4   :  { %495 = vsyncadd [#allocation3], 4294967264 }
 0x4d5   :  { %432 = vsyncpa [#allocation3], 1 }

</bundles_post_ra>
